<compile_context>
chip_gen: v7x
topology: tpu7x:2x2x1
jax: 0.10.0
libtpu: 0.0.40
codegen_flags: <defaults>
</compile_context>

<pallas_src>
import math
import numpy as np

import jax
import jax.numpy as jnp
from jax.experimental import pallas as pl
from jax.experimental.pallas import tpu as pltpu

# pywt 'haar' decomposition filters (dec_lo, dec_hi), pre-reversal.
# TODO(synk): only 'haar' is baked in (no pywt at runtime); other wavenames only
# change these coefficient lists -- the dense-matrix path is generic, the
# column-tiled path additionally requires a 2-tap filter.
_DEC_LO = [0.7071067811865476, 0.7071067811865476]
_DEC_HI = [-0.7071067811865476, 0.7071067811865476]


def build_idwt_matrices_1d(length, dec_lo=_DEC_LO, dec_hi=_DEC_HI):
    """Numpy port of IDWT_1D.get_matrix(): returns (matrix_low, matrix_high)."""
    assert length % 2 == 0, "IDWT_1D matrix builder only supports even lengths"
    band_low = list(dec_lo)
    band_low.reverse()
    band_high = list(dec_hi)
    band_high.reverse()
    assert len(band_low) == len(band_high)
    band_length = len(band_low)
    assert band_length % 2 == 0
    band_length_half = band_length // 2

    L1 = length
    L = math.floor(L1 / 2)
    matrix_h = np.zeros((L, L1 + band_length - 2), dtype=np.float64)
    matrix_g = np.zeros((L1 - L, L1 + band_length - 2), dtype=np.float64)
    end = None if band_length_half == 1 else (-band_length_half + 1)

    index = 0
    for i in range(L):
        for j in range(band_length):
            matrix_h[i, index + j] = band_low[j]
        index += 2
    index = 0
    for i in range(L1 - L):
        for j in range(band_length):
            matrix_g[i, index + j] = band_high[j]
        index += 2

    matrix_h = matrix_h[:, band_length_half - 1:end]    # (Len//2, Len)
    matrix_g = matrix_g[:, band_length_half - 1:end]    # (Len - Len//2, Len)
    return matrix_h.astype(np.float32), matrix_g.astype(np.float32)


def _blockdiag(mat, k):
    """Block-diagonal repeat of `mat`, k times (numpy, host side)."""
    if k <= 1:
        return mat
    r, c = mat.shape
    out = np.zeros((k * r, k * c), dtype=mat.dtype)
    for i in range(k):
        out[i * r:(i + 1) * r, i * c:(i + 1) * c] = mat
    return out


def _vmem_capacity_bytes():
    try:
        return int(pltpu.get_tpu_info().vmem_capacity_bytes)
    except Exception:
        return 64 * 1024 * 1024      # conservative default (v7x per-TensorCore)


def _pick_pack_factor(nc, length):
    """How many (N*C) rows to fuse into one lane-dense (>=128-wide) physical row."""
    if nc <= 1 or length >= 128:
        return 1
    k_target = min(16, -(-128 // length))                 # ceil(128/length)
    # block-diagonal matrices grow as k^2: keep the resident pair small
    while k_target > 1 and (k_target * k_target) * length * length * 4 > (4 << 20):
        k_target -= 1
    for cand in range(min(k_target, nc), 0, -1):          # must divide NC so the
        if nc % cand == 0:                                # reshape is a free view
            return cand
    return 1


def _pick_block_rows(rows, bytes_per_row, mat_resident_bytes, vmem_cap):
    """Largest legal row-block given correct VMEM accounting."""
    work_budget = int(min(0.45 * vmem_cap, 56 << 20))     # 28.8 MiB on v7x, 56 MiB on v5e/v6e
    data_budget = max(work_budget - mat_resident_bytes, 2 << 20)
    b = data_budget // max(bytes_per_row, 1)
    b = min(1024, max(8, (b // 8) * 8))
    return max(1, min(b, rows))


def _maybe_even_grid(rows, b):
    """v7x megacore: prefer an even number of row blocks so both TCs get equal work."""
    if rows <= b:
        return b
    g = -(-rows // b)
    if g % 2 == 0:
        return b
    nb = ((-(-rows // (g + 1)) + 7) // 8) * 8
    if 8 <= nb <= b and (-(-rows // nb)) % 2 == 0:
        return nb
    return b


def _vmem_limit_bytes(needed, cap):
    return int(min(int(0.9 * cap), max(32 << 20, int(needed) + (8 << 20))))


def _idwt1d_kernel(l_ref, h_ref, low_ref, high_ref, out_ref):
    """One (B, width) slab of output per grid step: two MXU dots + add."""
    acc = jnp.dot(l_ref[...], low_ref[...], preferred_element_type=jnp.float32)
    acc = acc + jnp.dot(h_ref[...], high_ref[...], preferred_element_type=jnp.float32)
    out_ref[...] = acc.astype(out_ref.dtype)


def idwt_1d(L, H, *, pack_factor=None, col_tile=None, block_rows=None,
            force_pallas=False):
    """Pallas IDWT_1D forward.

    L: (N, C, Len//2)       low-frequency component
    H: (N, C, Len - Len//2) high-frequency component
    returns the reconstructed sequence (N, C, Len).
    """
    assert L.ndim == 3 and H.ndim == 3
    N, C, lh_l = L.shape
    n2, c2, lh_h = H.shape
    assert (N, C) == (n2, c2)
    length = lh_l + lh_h
    assert length % 2 == 0, "odd reconstruction lengths are unsupported"
    assert lh_l == length // 2 and lh_h == length - length // 2

    mat_low_np, mat_high_np = build_idwt_matrices_1d(length)
    out_dtype = jnp.promote_types(L.dtype, jnp.float32)   # matches f32-matrix reference

    NC = N * C
    l2 = L.reshape(NC, lh_l)
    h2 = H.reshape(NC, lh_h)

    # Tiny problems: a single grid step is dominated by launch + pipeline
    # prologue; fused XLA matmuls win outright.
    if not force_pallas and NC * length <= 16384:
        out = (jnp.matmul(l2, jnp.asarray(mat_low_np))
               + jnp.matmul(h2, jnp.asarray(mat_high_np))).astype(out_dtype)
        return out.reshape(N, C, length)

    in_item = jnp.dtype(L.dtype).itemsize
    out_item = jnp.dtype(out_dtype).itemsize
    vmem_cap = _vmem_capacity_bytes()

    # ---------------- path selection ----------------
    k = pack_factor if pack_factor is not None else _pick_pack_factor(NC, length)
    if k < 1 or NC % k != 0:
        k = 1

    tn = None
    if k == 1 and len(_DEC_LO) == 2:
        # Haar's 2-tap band is exactly block-diagonal -> column tiling is exact.
        candidates = [col_tile] if col_tile is not None else \
            ([512, 256] if length >= 1024 else [])
        for cand in candidates:
            if (cand is not None and cand % 256 == 0
                    and length % cand == 0 and length > cand):
                tn = cand
                break

    if tn is None:
        # ---------------- lane-dense packed path (small / medium Len) ----------------
        rows = NC // k
        in_l, in_h, out_cols = k * lh_l, k * lh_h, k * length
        lp = l2.reshape(rows, in_l)                        # free row-major views
        hp = h2.reshape(rows, in_h)
        mat_low = jnp.asarray(_blockdiag(mat_low_np, k))   # (k*lh_l, k*Len)
        mat_high = jnp.asarray(_blockdiag(mat_high_np, k))

        mat_resident = 2 * (mat_low.size + mat_high.size) * 4   # x2 pipeline buffers
        per_row = (2 * (in_l * in_item + in_h * in_item + out_cols * out_item)
                   + out_cols * 4)                         # + f32 intermediate
        if block_rows is not None:
            B = max(1, min(int(block_rows), rows))
        else:
            B = _pick_block_rows(rows, per_row, mat_resident, vmem_cap)
            B = _maybe_even_grid(rows, B)
        grid = (pl.cdiv(rows, B),)

        needed = mat_resident + B * per_row
        flops = 2 * rows * (in_l + in_h) * out_cols
        bytes_accessed = (rows * (in_l + in_h) * in_item
                          + rows * out_cols * out_item
                          + (mat_low.size + mat_high.size) * 4)

        out = pl.pallas_call(
            _idwt1d_kernel,
            out_shape=jax.ShapeDtypeStruct((rows, out_cols), out_dtype),
            grid_spec=pltpu.PrefetchScalarGridSpec(
                num_scalar_prefetch=0,
                grid=grid,
                in_specs=[
                    pl.BlockSpec((B, in_l), lambda i: (i, 0)),
                    pl.BlockSpec((B, in_h), lambda i: (i, 0)),
                    pl.BlockSpec((k * lh_l, out_cols), lambda i: (0, 0)),  # resident
                    pl.BlockSpec((k * lh_h, out_cols), lambda i: (0, 0)),  # resident
                ],
                out_specs=pl.BlockSpec((B, out_cols), lambda i: (i, 0)),
            ),
            compiler_params=pltpu.CompilerParams(
                dimension_semantics=("parallel",),
                vmem_limit_bytes=_vmem_limit_bytes(needed, vmem_cap)),
            cost_estimate=pl.CostEstimate(
                flops=int(flops), transcendentals=0,
                bytes_accessed=int(bytes_accessed)),
        )(lp, hp, mat_low, mat_high)

        return out.reshape(N, C, length)

    # ---------------- column-tiled path (large Len, 2-tap filters) ----------------
    mat_low = jnp.asarray(mat_low_np)                      # (Len//2, Len)
    mat_high = jnp.asarray(mat_high_np)
    rows = NC
    tk = tn // 2
    col_blocks = length // tn

    mat_block_bytes = 2 * 2 * (tk * tn) * 4                # 2 matrices x 2 buffers
    per_row = 2 * (2 * tk * in_item + tn * out_item) + tn * 4
    if block_rows is not None:
        B = max(1, min(int(block_rows), rows))
    else:
        B = _pick_block_rows(rows, per_row, mat_block_bytes, vmem_cap)
        B = _maybe_even_grid(rows, B)
    row_blocks = pl.cdiv(rows, B)
    grid = (col_blocks, row_blocks)                        # rows innermost: matrix
                                                           # blocks re-DMA'd only per column tile
    needed = mat_block_bytes + B * per_row
    flops = 2 * rows * length * tn
    bytes_accessed = (rows * (lh_l + lh_h) * in_item
                      + rows * length * out_item
                      + (mat_low.size + mat_high.size) * 4)

    out = pl.pallas_call(
        _idwt1d_kernel,
        out_shape=jax.ShapeDtypeStruct((rows, length), out_dtype),
        grid_spec=pltpu.PrefetchScalarGridSpec(
            num_scalar_prefetch=0,
            grid=grid,
            in_specs=[
                pl.BlockSpec((B, tk), lambda c, r: (r, c)),
                pl.BlockSpec((B, tk), lambda c, r: (r, c)),
                pl.BlockSpec((tk, tn), lambda c, r: (c, c)),   # diagonal matrix block
                pl.BlockSpec((tk, tn), lambda c, r: (c, c)),
            ],
            out_specs=pl.BlockSpec((B, tn), lambda c, r: (r, c)),
        ),
        compiler_params=pltpu.CompilerParams(
            dimension_semantics=("parallel", "parallel"),
            vmem_limit_bytes=_vmem_limit_bytes(needed, vmem_cap)),
        cost_estimate=pl.CostEstimate(
            flops=int(flops), transcendentals=0,
            bytes_accessed=int(bytes_accessed)),
    )(l2, h2, mat_low, mat_high)

    return out.reshape(N, C, length)


def idwt_1d_reference(L, H):
    """Pure-JAX reference replicating IDWTFunction_1D.forward."""
    length = L.shape[-1] + H.shape[-1]
    mat_low_np, mat_high_np = build_idwt_matrices_1d(length)
    return (jnp.matmul(L, jnp.asarray(mat_low_np))
            + jnp.matmul(H, jnp.asarray(mat_high_np)))


if __name__ == "__main__":
    root = jax.random.PRNGKey(0)

    def run_case(idx, n, c, length, **kwargs):
        k1, k2 = jax.random.split(jax.random.fold_in(root, idx))
        Lf = jax.random.normal(k1, (n, c, length // 2), dtype=jnp.float32)
        Hf = jax.random.normal(k2, (n, c, length - length // 2), dtype=jnp.float32)
        out = jax.block_until_ready(idwt_1d(Lf, Hf, force_pallas=True, **kwargs))
        ref = jax.block_until_ready(idwt_1d_reference(Lf, Hf))
        assert out.shape == (n, c, length), f"shape mismatch in case {idx}"
        assert jnp.allclose(out, ref, atol=1e-5, rtol=1e-5), f"value mismatch in case {idx}"

    # 1) primary small demo shape: packed lane-dense path (k=8 -> 128-lane rows)
    run_case(0, 2, 4, 16)
    # 2) non-power-of-two channels / length (partial pack factor, full-dim blocks)
    run_case(1, 3, 5, 24)
    # 3) moderate width, k=2 packing -> 128-lane output rows
    run_case(2, 2, 8, 64)
    # 4) multi-step row pipeline with a partial tail block
    run_case(3, 6, 16, 32, block_rows=16)
    # 5) column-tiled (large-Len) path, forced small so the test stays quick
    run_case(4, 2, 2, 512, pack_factor=1, col_tile=256)

    print("KERNEL_OK")
</pallas_src>

<mosaic_0001>
module attributes {stable_mosaic.version = 11 : i64} {
  func.func @_idwt1d_kernel(%arg0: i32, %arg1: memref<1x64xf32, #tpu.memory_space<vmem>>, %arg2: memref<1x64xf32, #tpu.memory_space<vmem>>, %arg3: memref<64x128xf32, #tpu.memory_space<vmem>>, %arg4: memref<64x128xf32, #tpu.memory_space<vmem>>, %arg5: memref<1x128xf32, #tpu.memory_space<vmem>>) attributes {dimension_semantics = [#tpu.dimension_semantics<parallel>], iteration_bounds = array<i64: 1>, scalar_prefetch = 0 : i64, scratch_operands = 0 : i64, tpu.core_type = #tpu.core_type<tc>, window_params = [{transform_indices = @transform_0, window_bounds = array<i64: 1, 64>}, {transform_indices = @transform_1, window_bounds = array<i64: 1, 64>}, {pipeline_mode = #tpu.pipeline_mode<synchronous>, transform_indices = @transform_2, window_bounds = array<i64: 64, 128>}, {pipeline_mode = #tpu.pipeline_mode<synchronous>, transform_indices = @transform_3, window_bounds = array<i64: 64, 128>}, {transform_indices = @transform_4, window_bounds = array<i64: 1, 128>}]} {
    %c0 = arith.constant 0 : index
    %c0_0 = arith.constant 0 : index
    %0 = vector.load %arg1[%c0, %c0_0] : memref<1x64xf32, #tpu.memory_space<vmem>>, vector<1x64xf32>
    %c0_1 = arith.constant 0 : index
    %c0_2 = arith.constant 0 : index
    %1 = vector.load %arg3[%c0_1, %c0_2] : memref<64x128xf32, #tpu.memory_space<vmem>>, vector<64x128xf32>
    %cst = arith.constant dense<0.000000e+00> : vector<1x128xf32>
    %2 = tpu.matmul %0, %1, %cst {dimension_numbers = #tpu.dot_dimension_numbers<[1], [0], [0], [1], [0, 0, 1, 1], [], []>} : vector<1x64xf32>, vector<64x128xf32>, vector<1x128xf32> -> vector<1x128xf32>
    %c0_3 = arith.constant 0 : index
    %c0_4 = arith.constant 0 : index
    %3 = vector.load %arg2[%c0_3, %c0_4] : memref<1x64xf32, #tpu.memory_space<vmem>>, vector<1x64xf32>
    %c0_5 = arith.constant 0 : index
    %c0_6 = arith.constant 0 : index
    %4 = vector.load %arg4[%c0_5, %c0_6] : memref<64x128xf32, #tpu.memory_space<vmem>>, vector<64x128xf32>
    %cst_7 = arith.constant dense<0.000000e+00> : vector<1x128xf32>
    %5 = tpu.matmul %3, %4, %cst_7 {dimension_numbers = #tpu.dot_dimension_numbers<[1], [0], [0], [1], [0, 0, 1, 1], [], []>} : vector<1x64xf32>, vector<64x128xf32>, vector<1x128xf32> -> vector<1x128xf32>
    %6 = arith.addf %2, %5 : vector<1x128xf32>
    %c0_8 = arith.constant 0 : index
    %c0_9 = arith.constant 0 : index
    %7 = vector.load %arg5[%c0_8, %c0_9] : memref<1x128xf32, #tpu.memory_space<vmem>>, vector<1x128xf32>
    tpu.vector_store %arg5[%c0_8, %c0_9], %6 {strides = array<i32>} : memref<1x128xf32, #tpu.memory_space<vmem>>, vector<1x128xf32>,
    return
  }
  func.func @transform_0(%arg0: i32) -> (i32, i32) {
    %c0_i32 = arith.constant 0 : i32
    %c0_i32_0 = arith.constant 0 : i32
    return %arg0, %c0_i32 : i32, i32
  }
  func.func @transform_1(%arg0: i32) -> (i32, i32) {
    %c0_i32 = arith.constant 0 : i32
    %c0_i32_0 = arith.constant 0 : i32
    return %arg0, %c0_i32 : i32, i32
  }
  func.func @transform_2(%arg0: i32) -> (i32, i32) {
    %c0_i32 = arith.constant 0 : i32
    %c0_i32_0 = arith.constant 0 : i32
    %c0_i32_1 = arith.constant 0 : i32
    return %c0_i32, %c0_i32_0 : i32, i32
  }
  func.func @transform_3(%arg0: i32) -> (i32, i32) {
    %c0_i32 = arith.constant 0 : i32
    %c0_i32_0 = arith.constant 0 : i32
    %c0_i32_1 = arith.constant 0 : i32
    return %c0_i32, %c0_i32_0 : i32, i32
  }
  func.func @transform_4(%arg0: i32) -> (i32, i32) {
    %c0_i32 = arith.constant 0 : i32
    %c0_i32_0 = arith.constant 0 : i32
    return %arg0, %c0_i32 : i32, i32
  }
}

</mosaic_0001>

<bundles_post_ra>
// kernel: tpu_custom_call.1
= control target key start
LH: loop header
LB: loop body
LE: loop exit
PB: predicated region body
PF: predicated region fallthrough
CT: control target
= control target key end

     0   :  { %9 = vsyncpa [#allocation3], 0  ;;  %s516_s0 = inlined_call_operand.hbm [shape: f32[1,64], index: 0, kind: input, shape index: {}]   ;;  %s517_s1 = inlined_call_operand.vmem [shape: f32[1,64], index: 1, kind: input, shape index: {}]   ;;  %s518_s2 = inlined_call_operand.hbm [shape: f32[64,128], index: 2, kind: input, shape index: {}]   ;;  %s519_s3 = inlined_call_operand.hbm [shape: f32[64,128], index: 3, kind: input, shape index: {}]   ;;  %s520_s4 = inlined_call_operand.hbm [shape: f32[1,128], index: 4, kind: output, shape index: {}]  }
   0x1   :  { %10 = vsyncpa [#allocation6], 0 }
   0x2   :  { %11 = vsyncpa [#allocation4], 0  ;;  %s425_s15 = smov [#allocation5]   ;;  %s331_s19 = scalar_lea.hbm %s518_s2, 1024 }
   0x3   :  { %s29_s16 = sshll.u32 %s425_s15, 4  ;;  %p332_p0 = scmp.ne.s32.totalorder %s518_s2, %s331_s19  ;;  %s30_s16 = int_to_ptr.vmem [resolvable:$true] %s29_s16 }
   0x4   :  { %p335_p1 = scmp.lt.u32.totalorder %s331_s19, %s518_s2 }
   0x6   :  { %p337_p2 = pnand %p335_p1, %p332_p0 }
   0x8   :  { %340 = shalt.err (!%p337_p2)
}
   0x9   :  { %s341_s24 = scalar_lea.vmem %s30_s16, 1024  ;;  %p346_p4 = scmp.lt.s32.totalorder %s30_s16, %s30_s16 }
   0xa   :  { %p342_p3 = scmp.ne.s32.totalorder %s30_s16, %s341_s24  ;;  %p347_p5 = scmp.lt.s32.totalorder %s341_s24, %s341_s24 }
   0xc   :  { %p348_p6 = por %p347_p5, %p346_p4 }
   0xe   :  { %p349_p7 = pnand %p348_p6, %p342_p3 }
  0x10   :  { %352 = shalt.err (!%p349_p7)
}
  0x11   :  { %s426_s25 = smov 128   ;;  %s427_s26 = smov 8  }
  0x12   :  { %35 = dma.hbm_to_vmem [thread:$0]  %s518_s2, 1024, %s30_s16, [#allocation6], %s426_s25, %s426_s25, %s427_s26  }
  0x13   :  { %s428_s29 = smov [#allocation2]   ;;  %s429_s5 = smov [#allocation7]  }
  0x14   :  { %s18_s30 = sshll.u32 %s428_s29, 4  ;;  %s41_s6 = sshll.u32 %s429_s5, 4  ;;  %s19_s30 = int_to_ptr.vmem [resolvable:$true] %s18_s30  ;;  %s42_s6 = int_to_ptr.vmem [resolvable:$true] %s41_s6 }
  0x15   :  { %s353_s9 = scalar_lea.hbm %s516_s0, 16 }
  0x16   :  { %p354_p8 = scmp.ne.s32.totalorder %s516_s0, %s353_s9  ;;  %p357_p9 = scmp.lt.u32.totalorder %s353_s9, %s516_s0 }
  0x18   :  { %p359_p10 = pnand %p357_p9, %p354_p8 }
  0x1a   :  { %362 = shalt.err (!%p359_p10)
}
  0x1b   :  { %s363_s2 = scalar_lea.vmem %s19_s30, 16  ;;  %s367_s14 = scalar_lea.vmem %s19_s30, 32 }
  0x1c   :  { %p364_p11 = scmp.ne.s32.totalorder %s19_s30, %s363_s2  ;;  %p368_p12 = scmp.lt.s32.totalorder %s19_s30, %s19_s30 }
  0x1d   :  { %p369_p13 = scmp.lt.s32.totalorder %s367_s14, %s363_s2 }
  0x1f   :  { %p370_p0 = por %p369_p13, %p368_p12 }
  0x21   :  { %p371_p1 = pnand %p370_p0, %p364_p11 }
  0x23   :  { %374 = shalt.err (!%p371_p1)
}
  0x24   :  { %21 = dma.hbm_to_vmem [thread:$0]  %s516_s0, 16, %s19_s30, [#allocation3]  }
  0x25   :  { %s375_s19 = scalar_lea.hbm %s519_s3, 1024 }
  0x26   :  { %p376_p2 = scmp.ne.s32.totalorder %s519_s3, %s375_s19  ;;  %p379_p3 = scmp.lt.u32.totalorder %s375_s19, %s519_s3 }
  0x28   :  { %p381_p4 = pnand %p379_p3, %p376_p2 }
  0x2a   :  { %384 = shalt.err (!%p381_p4)
}
  0x2b   :  { %s385_s24 = scalar_lea.vmem %s42_s6, 1024  ;;  %p390_p6 = scmp.lt.s32.totalorder %s42_s6, %s42_s6 }
  0x2c   :  { %p386_p5 = scmp.ne.s32.totalorder %s42_s6, %s385_s24  ;;  %p391_p7 = scmp.lt.s32.totalorder %s385_s24, %s385_s24 }
  0x2e   :  { %p392_p8 = por %p391_p7, %p390_p6 }
  0x30   :  { %p393_p9 = pnand %p392_p8, %p386_p5 }
  0x32   :  { %396 = shalt.err (!%p393_p9)
}
  0x33   :  { %47 = dma.hbm_to_vmem [thread:$0]  %s519_s3, 1024, %s42_s6, [#allocation6], %s426_s25, %s426_s25, %s427_s26  }
  0x34   :  { %419 = dma.done.wait [#allocation3], 16  }
  0x35   :  { %420 = vsyncadd [#allocation3], 4294967280 }
  0x36   :  { %421 = dma.done.wait [#allocation6], 2048  }
  0x37   :  { %422 = vsyncadd [#allocation6], 4294965248  ;;  %v430_v0 = vmov 0.0|0.0   ;;  %vm431_vm0 = vmmov 0   ;;  %v432_v1 = vmov 0.0   ;;  %v67_v2 = vld [vmem:[#allocation7] sm:$0xff] }
  0x38   :  { %297 = vmatprep.subr.bf16.mxu1 %v430_v0  ;;  %309 = vmatprep.subr.bf16.mxu0 %v430_v0  ;;  %v68_v3 = vld [vmem:[#allocation7 + $0x8] sm:$0xff]  ;;  %v58_v4 = vld [vmem:[#allocation5] sm:$0xff]  ;;  %v69_v7 = vld [vmem:[#allocation7 + $0x10] sm:$0xff]  ;;  %vm75_vm1 = vcmask 523264   ;;  %s433_s26 = smov [#allocation8]  }
  0x39   :  { %275 = vmatprep.mubr.msk.f32.mxu1 %vm431_vm0, %v432_v1  ;;  %294 = vmatprep.mubr.msk.f32.mxu0 %vm431_vm0, %v432_v1  ;;  %v298_v5 = vpack.c.bf16 %v68_v3, %v67_v2  ;;  %v59_v6 = vld [vmem:[#allocation5 + $0x8] sm:$0xff]  ;;  %v70_v8 = vld [vmem:[#allocation7 + $0x18] sm:$0xff]  ;;  %v60_v10 = vld [vmem:[#allocation5 + $0x10] sm:$0xff]  ;;  %s229_s28 = sshll.u32 %s433_s26, 4  ;;  %s230_s28 = int_to_ptr.vmem [resolvable:$true] %s229_s28 }
  0x3a   :  { %v310_v9 = vpack.c.bf16 %v59_v6, %v58_v4  ;;  %v61_v11 = vld [vmem:[#allocation5 + $0x18] sm:$0xff]  ;;  %v301_v12 = vpack.c.bf16 %v70_v8, %v69_v7  ;;  %v71_v14 = vld [vmem:[#allocation7 + $0x20] sm:$0xff]  ;;  %v72_v15 = vld [vmem:[#allocation7 + $0x28] sm:$0xff]  ;;  %s397_s29 = scalar_lea.vmem %s230_s28, 16  ;;  %s401_s30 = scalar_lea.vmem %s230_s28, 32 }
  0x3b   :  { %299 = vmatpush3.bf16.msra.mxu1 %v298_v5  ;;  %v313_v13 = vpack.c.bf16 %v61_v11, %v60_v10  ;;  %v62_v16 = vld [vmem:[#allocation5 + $0x20] sm:$0xff]  ;;  %v63_v17 = vld [vmem:[#allocation5 + $0x28] sm:$0xff]  ;;  %v304_v18 = vpack.c.bf16 %v72_v15, %v71_v14  ;;  %v73_v20 = vld [vmem:[#allocation7 + $0x30] sm:$0xff]  ;;  %p398_p10 = scmp.ne.s32.totalorder %s230_s28, %s397_s29  ;;  %p402_p11 = scmp.lt.s32.totalorder %s230_s28, %s230_s28 }
  0x3c   :  { %311 = vmatpush3.bf16.msra.mxu0 %v310_v9  ;;  %300 = vmatprep.subr.bf16.mxu1 %v430_v0  ;;  %v316_v19 = vpack.c.bf16 %v63_v17, %v62_v16  ;;  %v74_v21 = vld [vmem:[#allocation7 + $0x38] sm:$0xff]  ;;  %v64_v22 = vld [vmem:[#allocation5 + $0x30] sm:$0xff]  ;;  %p403_p12 = scmp.lt.s32.totalorder %s401_s30, %s397_s29 }
  0x3d   :  { %312 = vmatprep.subr.bf16.mxu0 %v430_v0  ;;  %v65_v23 = vld [vmem:[#allocation5 + $0x38] sm:$0xff]  ;;  %v307_v24 = vpack.c.bf16 %v74_v21, %v73_v20 }
  0x3e   :  { %v319_v25 = vpack.c.bf16 %v65_v23, %v64_v22  ;;  %v66_v26 = vld [vmem:[%s517_s1] sm:$0x1]  ;;  %p404_p13 = por %p403_p12, %p402_p11 }
  0x3f   :  { %302 = vmatpush3.bf16.msra.mxu1 %v301_v12  ;;  %v57_v27 = vld [vmem:[#allocation2] sm:$0x1] }
  0x40   :  { %314 = vmatpush3.bf16.msra.mxu0 %v313_v13  ;;  %303 = vmatprep.subr.bf16.mxu1 %v430_v0  ;;  %p405_p0 = pnand %p404_p13, %p398_p10 }
  0x41   :  { %315 = vmatprep.subr.bf16.mxu0 %v430_v0 }
  0x43   :  { %305 = vmatpush3.bf16.msra.mxu1 %v304_v18 }
  0x44   :  { %317 = vmatpush3.bf16.msra.mxu0 %v316_v19  ;;  %306 = vmatprep.subr.bf16.mxu1 %v430_v0 }
  0x45   :  { %318 = vmatprep.subr.bf16.mxu0 %v430_v0 }
  0x47   :  { %308 = vmatpush3.bf16.msra.mxu1 %v307_v24 }
  0x48   :  { %320 = vmatpush3.bf16.msra.mxu0 %v319_v25 }
  0x4a   :  { %276 = vmatmul.mubr.msk.f32.vlgmr.msra.gmra.mrb[0].mxu1 %vm75_vm1, %v66_v26 }
  0x4b   :  { %295 = vmatmul.mubr.msk.f32.vlgmr.msra.gmra.mrb[0].mxu0 %vm75_vm1, %v57_v27 }
 0x11d   :  { %v145_v28 = vpop.f32.mrb[0].mxu1 }
 0x11e   :  { %v218_v29 = vpop.f32.mrb[0].mxu0  ;;  %v277_v30 = vpop.f32.mrb[1].mxu1 }
 0x11f   :  { %v219_v31 = vadd.f32 %v218_v29, %v145_v28  ;;  %v296_v32 = vpop.f32.mrb[1].mxu0 }
 0x121   :  { %222 = vst [vmem:[#allocation8] sm:$0x1] %v219_v31 }
 0x122   :  { %408 = shalt.err (!%p405_p0)
}
 0x123   :  { %s409_s6 = scalar_lea.hbm %s520_s4, 16 }
 0x124   :  { %p410_p1 = scmp.ne.s32.totalorder %s520_s4, %s409_s6  ;;  %p413_p2 = scmp.lt.u32.totalorder %s409_s6, %s520_s4 }
 0x126   :  { %p415_p3 = pnand %p413_p2, %p410_p1 }
 0x128   :  { %418 = shalt.err (!%p415_p3)
}
 0x129   :  { %232 = dma.vmem_to_hbm [thread:$0]  %s230_s28, 16, %s520_s4, [#allocation4]  }
 0x12a   :  { %423 = dma.done.wait [#allocation4], 16  }
 0x12b   :  { %424 = vsyncadd [#allocation4], 4294967280 }
 0x12c   :  { %236 = vsyncpa [#allocation3], 1 }
 0x12d   :  { %237 = vsyncpa [#allocation6], 1 }
 0x12e   :  { %238 = vsyncpa [#allocation4], 1 }

</bundles_post_ra>
